<compile_context>
chip_gen: v5e
topology: v5e:2x2
jax: 0.10.0
libtpu: 0.0.40
codegen_flags: <defaults>
</compile_context>

<pallas_src>
import jax
import jax.numpy as jnp
from jax.experimental import pallas as pl
from jax.experimental.pallas import tpu as pltpu

HP = 128          # padded gate / hidden lane width (one full lane group)
NG = 3 * HP       # fused gate blocks: [r | z | n]


def _make_head_kernel(hidden_dim):
    H = hidden_dim

    def kernel(hi_ref,                          # scalar-prefetch head index (used by index_maps)
               x_ref, h0_ref,
               wgx_ref, bgx_ref, wgh_ref, bhn_ref,
               w1_ref, b1_ref, wr_ref, br_ref,
               y_ref, hout_ref,
               h_vmem):
        t = pl.program_id(0)

        # Load the initial hidden state once; it is carried across the
        # (recurrent, hence "arbitrary") time grid axis in VMEM scratch.
        @pl.when(t == 0)
        def _():
            h_vmem[...] = h0_ref[...]

        x = x_ref[...]                 # (B, F)
        h = h_vmem[...]                # (B, HP); INVARIANT: lanes [H:] are exactly 0

        # Gate matmuls — only non-zero weight blocks are stored / DMA'd:
        #   gx = [W_ir x | W_iz x | W_in x] + [b_ir+b_hr | b_iz+b_hz | b_in]
        #   gh = [W_hr h | W_hz h | W_hn h]
        gx = jnp.dot(x, wgx_ref[...], preferred_element_type=jnp.float32) + bgx_ref[...]
        gh = jnp.dot(h[:, :H], wgh_ref[...], preferred_element_type=jnp.float32)

        r = jax.nn.sigmoid(gx[:, 0 * HP:1 * HP] + gh[:, 0 * HP:1 * HP])
        z = jax.nn.sigmoid(gx[:, 1 * HP:2 * HP] + gh[:, 1 * HP:2 * HP])
        n = jnp.tanh(gx[:, 2 * HP:3 * HP] + r * (gh[:, 2 * HP:3 * HP] + bhn_ref[...]))

        # Padded lanes: n = tanh(0 + r*0) = 0, h = 0  =>  h_new padded lanes
        # stay exactly 0 (even though z = 0.5 there).  This invariant is
        # load-bearing for the carried scratch and the K=H contractions below;
        # do not break it when editing the packing code.
        h_new = (1.0 - z) * n + z * h                     # (B, HP)
        h_vmem[...] = h_new
        hout_ref[...] = h_new

        # fn1 + tanh: contract only over the real H lanes (w1 is (H, HP)).
        tt = jnp.tanh(jnp.dot(h_new[:, :H], w1_ref[...],
                              preferred_element_type=jnp.float32) + b1_ref[...])   # (B, HP)

        # reg (hidden -> 1): VPU multiply + lane reduce instead of an N=1 matmul.
        y = jnp.sum(tt * wr_ref[...], axis=-1, keepdims=True) + br_ref[...]        # (B, 1)
        y_ref[...] = y.astype(y_ref.dtype)

    return kernel


@jax.jit
def _forward_seq(head_idx, x_seq, h0_pad, packed):
    """Run T recurrent Head steps in ONE pallas_call; head picked via prefetch index."""
    T, B, F = x_seq.shape
    H = packed["wgh"].shape[1]

    kernel = _make_head_kernel(H)

    grid_spec = pltpu.PrefetchScalarGridSpec(
        num_scalar_prefetch=1,
        grid=(T,),
        in_specs=[
            pl.BlockSpec((None, B, F), lambda t, hi: (t, 0, 0)),         # x_t
            pl.BlockSpec((B, HP),      lambda t, hi: (0, 0)),            # h0 (zero-padded)
            # Weights: constant block index across t -> DMA'd once, VMEM-resident.
            pl.BlockSpec((None, F, NG), lambda t, hi: (hi[0], 0, 0)),    # wgx
            pl.BlockSpec((None, 1, NG), lambda t, hi: (hi[0], 0, 0)),    # bgx
            pl.BlockSpec((None, H, NG), lambda t, hi: (hi[0], 0, 0)),    # wgh
            pl.BlockSpec((None, 1, HP), lambda t, hi: (hi[0], 0, 0)),    # bhn
            pl.BlockSpec((None, H, HP), lambda t, hi: (hi[0], 0, 0)),    # w1
            pl.BlockSpec((None, 1, HP), lambda t, hi: (hi[0], 0, 0)),    # b1
            pl.BlockSpec((None, 1, HP), lambda t, hi: (hi[0], 0, 0)),    # wr
            pl.BlockSpec((None, 1, 1),  lambda t, hi: (hi[0], 0, 0)),    # br
        ],
        out_specs=[
            pl.BlockSpec((None, B, 1), lambda t, hi: (t, 0, 0)),         # y_t
            pl.BlockSpec((B, HP),      lambda t, hi: (0, 0)),            # final hidden (resident)
        ],
        scratch_shapes=[pltpu.VMEM((B, HP), jnp.float32)],               # carried hidden state
    )

    w_bytes = 4 * (F * NG + NG + H * NG + HP + H * HP + HP + HP + 1)     # DMA'd once per call
    io_bytes = 4 * (T * B * F + B * HP + T * B + B * HP)
    cost = pl.CostEstimate(
        flops=T * (2 * B * ((F + H) * NG + H * HP) + 10 * B * HP),
        transcendentals=T * 4 * B * HP,
        bytes_accessed=w_bytes + io_bytes,
    )

    return pl.pallas_call(
        kernel,
        out_shape=(jax.ShapeDtypeStruct((T, B, 1), jnp.float32),
                   jax.ShapeDtypeStruct((B, HP), jnp.float32)),
        grid_spec=grid_spec,
        compiler_params=pltpu.CompilerParams(dimension_semantics=("arbitrary",)),
        cost_estimate=cost,
    )(head_idx, x_seq, h0_pad,
      packed["wgx"], packed["bgx"], packed["wgh"], packed["bhn"],
      packed["w1"], packed["b1"], packed["wr"], packed["br"])


def make_head_params(key, x_dim, a_dim):
    """Deterministic synthetic init matching the PyTorch parameter shapes."""
    ks = jax.random.split(key, 8)
    s_gru = 1.0 / jnp.sqrt(a_dim)
    s_lin = 1.0 / jnp.sqrt(a_dim)
    u = lambda k, shape, s: jax.random.uniform(k, shape, jnp.float32, -s, s)
    return {
        "w_ih": u(ks[0], (3 * a_dim, x_dim), s_gru),   # GRUCell.weight_ih
        "w_hh": u(ks[1], (3 * a_dim, a_dim), s_gru),   # GRUCell.weight_hh
        "b_ih": u(ks[2], (3 * a_dim,), s_gru),         # GRUCell.bias_ih
        "b_hh": u(ks[3], (3 * a_dim,), s_gru),         # GRUCell.bias_hh
        "w_fn1": u(ks[4], (a_dim, a_dim), s_lin),      # fn1.weight
        "b_fn1": u(ks[5], (a_dim,), s_lin),            # fn1.bias
        "w_reg": u(ks[6], (1, a_dim), s_lin),          # reg.weight
        "b_reg": u(ks[7], (1,), s_lin),                # reg.bias
    }


def _pack_heads(heads, x_dim, a_dim):
    """One-time layout prep: transpose, split gates, pad to 128 lanes, stack heads.

    No zero weight blocks are stored: gate blocks are [r | z | n] on both the
    x side and the h side; the only padding is gate-width H -> 128 lanes.
    """
    F, H = x_dim, a_dim
    assert H <= HP and F >= 1

    def padc(a):   # pad last dim to HP
        return jnp.pad(a, ((0, 0), (0, HP - a.shape[-1])))

    def padv(v):   # pad 1-D vector to HP
        return jnp.pad(v, (0, HP - v.shape[0]))

    def pack_one(p):
        w_ih, w_hh = p["w_ih"], p["w_hh"]
        b_ih, b_hh = p["b_ih"], p["b_hh"]
        w_ir, w_iz, w_in = w_ih[:H], w_ih[H:2 * H], w_ih[2 * H:]
        w_hr, w_hz, w_hn = w_hh[:H], w_hh[H:2 * H], w_hh[2 * H:]
        b_ir, b_iz, b_in = b_ih[:H], b_ih[H:2 * H], b_ih[2 * H:]
        b_hr, b_hz, b_hn = b_hh[:H], b_hh[H:2 * H], b_hh[2 * H:]

        wgx = jnp.concatenate([padc(w_ir.T), padc(w_iz.T), padc(w_in.T)], axis=-1)   # (F, 3*HP)
        wgh = jnp.concatenate([padc(w_hr.T), padc(w_hz.T), padc(w_hn.T)], axis=-1)   # (H, 3*HP)
        bgx = jnp.concatenate([padv(b_ir + b_hr), padv(b_iz + b_hz),
                               padv(b_in)])[None, :]                                 # (1, 3*HP)
        bhn = padv(b_hn)[None, :]                                                    # (1, HP)

        w1 = padc(p["w_fn1"].T)                   # (H, HP)  -- rows NOT padded (K = H)
        b1 = padv(p["b_fn1"])[None, :]            # (1, HP)
        wr = padc(p["w_reg"])                     # (1, HP)
        br = p["b_reg"][None, :]                  # (1, 1)
        return dict(wgx=wgx, bgx=bgx, wgh=wgh, bhn=bhn, w1=w1, b1=b1, wr=wr, br=br)

    per_head = [pack_one(p) for p in heads]
    return {k: jnp.stack([ph[k] for ph in per_head]) for k in per_head[0]}


class MyModulePallas:
    """JAX/Pallas version of MyModule(feature_type='focus_measures')."""

    def __init__(self, a_dim, feature_len, key):
        self.x_dim = feature_len
        self.a_dim = a_dim
        keys = jax.random.split(key, 5)
        self.heads = [make_head_params(k, feature_len, a_dim) for k in keys]
        # All layout work done once here: transposed, padded, bias-fused,
        # stacked over the 5 heads.
        self.packed = _pack_heads(self.heads, feature_len, a_dim)
        # TODO(synk): 'cnn_features' path (pretrained resnet18 backbone) not
        # implemented — it depends on external pretrained weights.

    def _pad_h(self, h):
        return jnp.pad(h, ((0, 0), (0, HP - h.shape[-1])))

    def __call__(self, x, h, i=0):
        """Exact MyModule.forward semantics (single GRU step): returns (x, y)."""
        head_idx = jnp.asarray([i], jnp.int32)
        y_seq, _ = _forward_seq(head_idx, x[None], self._pad_h(h), self.packed)
        return x, y_seq[0, :, 0]                   # (x, (B,))

    def forward_seq(self, x_seq, h0, i=0):
        """Recurrent use: T head steps inside ONE pallas_call (weights DMA'd once)."""
        head_idx = jnp.asarray([i], jnp.int32)
        y_seq, h_fin = _forward_seq(head_idx, x_seq, self._pad_h(h0), self.packed)
        return y_seq[..., 0], h_fin[:, :self.a_dim]   # (T, B), (B, H)


def _reference_step(x, h, p):
    """Pure-JAX reference (PyTorch GRUCell + Linear semantics). Returns (y, h_new)."""
    H = h.shape[-1]
    hi = jax.lax.Precision.HIGHEST
    gx = jnp.dot(x, p["w_ih"].T, precision=hi) + p["b_ih"]
    gh = jnp.dot(h, p["w_hh"].T, precision=hi) + p["b_hh"]
    r = jax.nn.sigmoid(gx[:, :H] + gh[:, :H])
    z = jax.nn.sigmoid(gx[:, H:2 * H] + gh[:, H:2 * H])
    n = jnp.tanh(gx[:, 2 * H:] + r * gh[:, 2 * H:])
    h_new = (1.0 - z) * n + z * h
    t = jnp.tanh(jnp.dot(h_new, p["w_fn1"].T, precision=hi) + p["b_fn1"])
    y = (jnp.dot(t, p["w_reg"].T, precision=hi) + p["b_reg"])[:, 0]
    return y, h_new


if __name__ == "__main__":
    B, FEAT, HID, T = 4, 16, 32, 8    # batch, feature_len (x_dim), a_dim, timesteps

    key = jax.random.PRNGKey(0)
    k_mod, k_x, k_h, k_seq = jax.random.split(key, 4)

    model = MyModulePallas(a_dim=HID, feature_len=FEAT, key=k_mod)

    x = jax.random.normal(k_x, (B, FEAT), jnp.float32)
    h = jax.random.normal(k_h, (B, HID), jnp.float32)

    # 1) Single-step forward (matches MyModule.forward) for two different heads
    #    through the same compiled kernel.
    for head_i in (0, 3):
        x_out, y = model(x, h, i=head_i)
        y = jax.block_until_ready(y)
        y_ref, _ = _reference_step(x, h, model.heads[head_i])
        assert x_out.shape == (B, FEAT)
        assert y.shape == (B,)
        assert jnp.allclose(y, y_ref, atol=1e-4, rtol=1e-4), (head_i, y, y_ref)

    # 2) Recurrent sequence: T steps inside one pallas_call, weights VMEM-resident.
    x_seq = jax.random.normal(k_seq, (T, B, FEAT), jnp.float32)
    y_seq, h_fin = model.forward_seq(x_seq, h, i=2)
    y_seq = jax.block_until_ready(y_seq)

    h_ref = h
    ys_ref = []
    for t in range(T):
        y_t, h_ref = _reference_step(x_seq[t], h_ref, model.heads[2])
        ys_ref.append(y_t)
    ys_ref = jnp.stack(ys_ref)

    assert y_seq.shape == (T, B) and h_fin.shape == (B, HID)
    assert jnp.allclose(y_seq, ys_ref, atol=1e-4, rtol=1e-4), (y_seq, ys_ref)
    assert jnp.allclose(h_fin, h_ref, atol=1e-4, rtol=1e-4)

    print("KERNEL_OK")
</pallas_src>

<mosaic_0001>
module attributes {stable_mosaic.version = 11 : i64} {
  func.func @kernel(%arg0: i32, %arg1: memref<1xi32, #tpu.memory_space<smem>>, %arg2: memref<1x4x16xf32, #tpu.memory_space<vmem>>, %arg3: memref<4x128xf32, #tpu.memory_space<vmem>>, %arg4: memref<1x16x384xf32, #tpu.memory_space<vmem>>, %arg5: memref<1x1x384xf32, #tpu.memory_space<vmem>>, %arg6: memref<1x32x384xf32, #tpu.memory_space<vmem>>, %arg7: memref<1x1x128xf32, #tpu.memory_space<vmem>>, %arg8: memref<1x32x128xf32, #tpu.memory_space<vmem>>, %arg9: memref<1x1x128xf32, #tpu.memory_space<vmem>>, %arg10: memref<1x1x128xf32, #tpu.memory_space<vmem>>, %arg11: memref<1x1x1xf32, #tpu.memory_space<vmem>>, %arg12: memref<1x4x1xf32, #tpu.memory_space<vmem>>, %arg13: memref<4x128xf32, #tpu.memory_space<vmem>>, %arg14: memref<4x128xf32, #tpu.memory_space<vmem>>) attributes {dimension_semantics = [#tpu.dimension_semantics<arbitrary>], iteration_bounds = array<i64: 1>, scalar_prefetch = 1 : i64, scratch_operands = 1 : i64, tpu.core_type = #tpu.core_type<tc>, window_params = [{transform_indices = @transform_0, window_bounds = array<i64: 1, 4, 16>}, {pipeline_mode = #tpu.pipeline_mode<synchronous>, transform_indices = @transform_1, window_bounds = array<i64: 4, 128>}, {transform_indices = @transform_2, window_bounds = array<i64: 1, 16, 384>}, {transform_indices = @transform_3, window_bounds = array<i64: 1, 1, 384>}, {transform_indices = @transform_4, window_bounds = array<i64: 1, 32, 384>}, {transform_indices = @transform_5, window_bounds = array<i64: 1, 1, 128>}, {transform_indices = @transform_6, window_bounds = array<i64: 1, 32, 128>}, {transform_indices = @transform_7, window_bounds = array<i64: 1, 1, 128>}, {transform_indices = @transform_8, window_bounds = array<i64: 1, 1, 128>}, {transform_indices = @transform_9, window_bounds = array<i64: 1, 1, 1>}, {transform_indices = @transform_10, window_bounds = array<i64: 1, 4, 1>}, {pipeline_mode = #tpu.pipeline_mode<synchronous>, transform_indices = @transform_11, window_bounds = array<i64: 4, 128>}]} {
    %c0_i32 = arith.constant 0 : i32
    %0 = arith.cmpi eq, %arg0, %c0_i32 : i32
    %1 = arith.extui %0 : i1 to i32
    %c0_i32_0 = arith.constant 0 : i32
    %2 = arith.cmpi ne, %1, %c0_i32_0 : i32
    scf.if %2 {
      %c0_42 = arith.constant 0 : index
      %c0_43 = arith.constant 0 : index
      %71 = vector.load %arg3[%c0_42, %c0_43] : memref<4x128xf32, #tpu.memory_space<vmem>>, vector<4x128xf32>
      %c0_44 = arith.constant 0 : index
      %c0_45 = arith.constant 0 : index
      %72 = vector.load %arg14[%c0_44, %c0_45] : memref<4x128xf32, #tpu.memory_space<vmem>>, vector<4x128xf32>
      tpu.vector_store %arg14[%c0_44, %c0_45], %71 {strides = array<i32>} : memref<4x128xf32, #tpu.memory_space<vmem>>, vector<4x128xf32>,
    } else {
    }
    %c0 = arith.constant 0 : index
    %c0_1 = arith.constant 0 : index
    %c0_2 = arith.constant 0 : index
    %3 = vector.load %arg2[%c0, %c0_1, %c0_2] : memref<1x4x16xf32, #tpu.memory_space<vmem>>, vector<1x4x16xf32>
    %4 = vector.shape_cast %3 : vector<1x4x16xf32> to vector<4x16xf32>
    %c0_3 = arith.constant 0 : index
    %c0_4 = arith.constant 0 : index
    %5 = vector.load %arg14[%c0_3, %c0_4] : memref<4x128xf32, #tpu.memory_space<vmem>>, vector<4x128xf32>
    %c0_5 = arith.constant 0 : index
    %c0_6 = arith.constant 0 : index
    %c0_7 = arith.constant 0 : index
    %6 = vector.load %arg4[%c0_5, %c0_6, %c0_7] : memref<1x16x384xf32, #tpu.memory_space<vmem>>, vector<1x16x384xf32>
    %7 = vector.shape_cast %6 : vector<1x16x384xf32> to vector<16x384xf32>
    %cst = arith.constant dense<0.000000e+00> : vector<4x384xf32>
    %8 = tpu.matmul %4, %7, %cst {dimension_numbers = #tpu.dot_dimension_numbers<[1], [0], [0], [1], [0, 0, 1, 1], [], []>} : vector<4x16xf32>, vector<16x384xf32>, vector<4x384xf32> -> vector<4x384xf32>
    %c0_8 = arith.constant 0 : index
    %c0_9 = arith.constant 0 : index
    %c0_10 = arith.constant 0 : index
    %9 = vector.load %arg5[%c0_8, %c0_9, %c0_10] : memref<1x1x384xf32, #tpu.memory_space<vmem>>, vector<1x1x384xf32>
    %10 = vector.shape_cast %9 : vector<1x1x384xf32> to vector<1x384xf32>
    %11 = vector.broadcast %10 : vector<1x384xf32> to vector<4x384xf32>
    %12 = arith.addf %8, %11 : vector<4x384xf32>
    %13 = vector.extract_strided_slice %5 {offsets = [0, 0], sizes = [4, 32], strides = [1, 1]} : vector<4x128xf32> to vector<4x32xf32>
    %c0_11 = arith.constant 0 : index
    %c0_12 = arith.constant 0 : index
    %c0_13 = arith.constant 0 : index
    %14 = vector.load %arg6[%c0_11, %c0_12, %c0_13] : memref<1x32x384xf32, #tpu.memory_space<vmem>>, vector<1x32x384xf32>
    %15 = vector.shape_cast %14 : vector<1x32x384xf32> to vector<32x384xf32>
    %cst_14 = arith.constant dense<0.000000e+00> : vector<4x384xf32>
    %16 = tpu.matmul %13, %15, %cst_14 {dimension_numbers = #tpu.dot_dimension_numbers<[1], [0], [0], [1], [0, 0, 1, 1], [], []>} : vector<4x32xf32>, vector<32x384xf32>, vector<4x384xf32> -> vector<4x384xf32>
    %17 = vector.extract_strided_slice %12 {offsets = [0, 0], sizes = [4, 128], strides = [1, 1]} : vector<4x384xf32> to vector<4x128xf32>
    %18 = vector.extract_strided_slice %16 {offsets = [0, 0], sizes = [4, 128], strides = [1, 1]} : vector<4x384xf32> to vector<4x128xf32>
    %19 = arith.addf %17, %18 : vector<4x128xf32>
    %20 = arith.negf %19 : vector<4x128xf32>
    %21 = math.exp %20 : vector<4x128xf32>
    %cst_15 = arith.constant 1.000000e+00 : f32
    %22 = vector.broadcast %cst_15 : f32 to vector<4x128xf32>
    %23 = arith.addf %22, %21 : vector<4x128xf32>
    %24 = arith.divf %22, %23 : vector<4x128xf32>
    %25 = vector.extract_strided_slice %12 {offsets = [0, 128], sizes = [4, 128], strides = [1, 1]} : vector<4x384xf32> to vector<4x128xf32>
    %26 = vector.extract_strided_slice %16 {offsets = [0, 128], sizes = [4, 128], strides = [1, 1]} : vector<4x384xf32> to vector<4x128xf32>
    %27 = arith.addf %25, %26 : vector<4x128xf32>
    %28 = arith.negf %27 : vector<4x128xf32>
    %29 = math.exp %28 : vector<4x128xf32>
    %cst_16 = arith.constant 1.000000e+00 : f32
    %30 = vector.broadcast %cst_16 : f32 to vector<4x128xf32>
    %31 = arith.addf %30, %29 : vector<4x128xf32>
    %32 = arith.divf %30, %31 : vector<4x128xf32>
    %33 = vector.extract_strided_slice %12 {offsets = [0, 256], sizes = [4, 128], strides = [1, 1]} : vector<4x384xf32> to vector<4x128xf32>
    %34 = vector.extract_strided_slice %16 {offsets = [0, 256], sizes = [4, 128], strides = [1, 1]} : vector<4x384xf32> to vector<4x128xf32>
    %c0_17 = arith.constant 0 : index
    %c0_18 = arith.constant 0 : index
    %c0_19 = arith.constant 0 : index
    %35 = vector.load %arg7[%c0_17, %c0_18, %c0_19] : memref<1x1x128xf32, #tpu.memory_space<vmem>>, vector<1x1x128xf32>
    %36 = vector.shape_cast %35 : vector<1x1x128xf32> to vector<1x128xf32>
    %37 = vector.broadcast %36 : vector<1x128xf32> to vector<4x128xf32>
    %38 = arith.addf %34, %37 : vector<4x128xf32>
    %39 = arith.mulf %24, %38 : vector<4x128xf32>
    %40 = arith.addf %33, %39 : vector<4x128xf32>
    %41 = math.tanh %40 : vector<4x128xf32>
    %cst_20 = arith.constant 1.000000e+00 : f32
    %42 = vector.broadcast %cst_20 : f32 to vector<4x128xf32>
    %43 = arith.subf %42, %32 : vector<4x128xf32>
    %44 = arith.mulf %43, %41 : vector<4x128xf32>
    %45 = arith.mulf %32, %5 : vector<4x128xf32>
    %46 = arith.addf %44, %45 : vector<4x128xf32>
    %c0_21 = arith.constant 0 : index
    %c0_22 = arith.constant 0 : index
    %47 = vector.load %arg14[%c0_21, %c0_22] : memref<4x128xf32, #tpu.memory_space<vmem>>, vector<4x128xf32>
    tpu.vector_store %arg14[%c0_21, %c0_22], %46 {strides = array<i32>} : memref<4x128xf32, #tpu.memory_space<vmem>>, vector<4x128xf32>,
    %c0_23 = arith.constant 0 : index
    %c0_24 = arith.constant 0 : index
    %48 = vector.load %arg13[%c0_23, %c0_24] : memref<4x128xf32, #tpu.memory_space<vmem>>, vector<4x128xf32>
    tpu.vector_store %arg13[%c0_23, %c0_24], %46 {strides = array<i32>} : memref<4x128xf32, #tpu.memory_space<vmem>>, vector<4x128xf32>,
    %49 = vector.extract_strided_slice %46 {offsets = [0, 0], sizes = [4, 32], strides = [1, 1]} : vector<4x128xf32> to vector<4x32xf32>
    %c0_25 = arith.constant 0 : index
    %c0_26 = arith.constant 0 : index
    %c0_27 = arith.constant 0 : index
    %50 = vector.load %arg8[%c0_25, %c0_26, %c0_27] : memref<1x32x128xf32, #tpu.memory_space<vmem>>, vector<1x32x128xf32>
    %51 = vector.shape_cast %50 : vector<1x32x128xf32> to vector<32x128xf32>
    %cst_28 = arith.constant dense<0.000000e+00> : vector<4x128xf32>
    %52 = tpu.matmul %49, %51, %cst_28 {dimension_numbers = #tpu.dot_dimension_numbers<[1], [0], [0], [1], [0, 0, 1, 1], [], []>} : vector<4x32xf32>, vector<32x128xf32>, vector<4x128xf32> -> vector<4x128xf32>
    %c0_29 = arith.constant 0 : index
    %c0_30 = arith.constant 0 : index
    %c0_31 = arith.constant 0 : index
    %53 = vector.load %arg9[%c0_29, %c0_30, %c0_31] : memref<1x1x128xf32, #tpu.memory_space<vmem>>, vector<1x1x128xf32>
    %54 = vector.shape_cast %53 : vector<1x1x128xf32> to vector<1x128xf32>
    %55 = vector.broadcast %54 : vector<1x128xf32> to vector<4x128xf32>
    %56 = arith.addf %52, %55 : vector<4x128xf32>
    %57 = math.tanh %56 : vector<4x128xf32>
    %c0_32 = arith.constant 0 : index
    %c0_33 = arith.constant 0 : index
    %c0_34 = arith.constant 0 : index
    %58 = vector.load %arg10[%c0_32, %c0_33, %c0_34] : memref<1x1x128xf32, #tpu.memory_space<vmem>>, vector<1x1x128xf32>
    %59 = vector.shape_cast %58 : vector<1x1x128xf32> to vector<1x128xf32>
    %60 = vector.broadcast %59 : vector<1x128xf32> to vector<4x128xf32>
    %61 = arith.mulf %57, %60 : vector<4x128xf32>
    %cst_35 = arith.constant dense<0.000000e+00> : vector<4xf32>
    %62 = vector.multi_reduction <add>, %61, %cst_35 [1] : vector<4x128xf32> to vector<4xf32>
    %63 = vector.shape_cast %62 : vector<4xf32> to vector<4x1xf32>
    %c0_36 = arith.constant 0 : index
    %c0_37 = arith.constant 0 : index
    %c0_38 = arith.constant 0 : index
    %64 = vector.load %arg11[%c0_36, %c0_37, %c0_38] : memref<1x1x1xf32, #tpu.memory_space<vmem>>, vector<1x1x1xf32>
    %65 = vector.shape_cast %64 : vector<1x1x1xf32> to vector<1x1xf32>
    %66 = vector.broadcast %65 : vector<1x1xf32> to vector<4x1xf32>
    %67 = arith.addf %63, %66 : vector<4x1xf32>
    %c0_39 = arith.constant 0 : index
    %c0_40 = arith.constant 0 : index
    %c0_41 = arith.constant 0 : index
    %68 = vector.load %arg12[%c0_39, %c0_40, %c0_41] : memref<1x4x1xf32, #tpu.memory_space<vmem>>, vector<1x4x1xf32>
    %69 = vector.shape_cast %68 : vector<1x4x1xf32> to vector<4x1xf32>
    %70 = vector.shape_cast %67 : vector<4x1xf32> to vector<1x4x1xf32>
    tpu.vector_store %arg12[%c0_39, %c0_40, %c0_41], %70 {strides = array<i32>} : memref<1x4x1xf32, #tpu.memory_space<vmem>>, vector<1x4x1xf32>,
    return
  }
  func.func @transform_0(%arg0: i32, %arg1: memref<1xi32, #tpu.memory_space<smem>>) -> (i32, i32, i32) {
    %c0_i32 = arith.constant 0 : i32
    %c0_i32_0 = arith.constant 0 : i32
    %c0_i32_1 = arith.constant 0 : i32
    return %arg0, %c0_i32, %c0_i32_0 : i32, i32, i32
  }
  func.func @transform_1(%arg0: i32, %arg1: memref<1xi32, #tpu.memory_space<smem>>) -> (i32, i32) {
    %c0_i32 = arith.constant 0 : i32
    %c0_i32_0 = arith.constant 0 : i32
    %c0_i32_1 = arith.constant 0 : i32
    return %c0_i32, %c0_i32_0 : i32, i32
  }
  func.func @transform_2(%arg0: i32, %arg1: memref<1xi32, #tpu.memory_space<smem>>) -> (i32, i32, i32) {
    %c0 = arith.constant 0 : index
    %0 = memref.load %arg1[%c0] : memref<1xi32, #tpu.memory_space<smem>>
    %c0_i32 = arith.constant 0 : i32
    %c0_i32_0 = arith.constant 0 : i32
    %c0_i32_1 = arith.constant 0 : i32
    return %0, %c0_i32, %c0_i32_0 : i32, i32, i32
  }
  func.func @transform_3(%arg0: i32, %arg1: memref<1xi32, #tpu.memory_space<smem>>) -> (i32, i32, i32) {
    %c0 = arith.constant 0 : index
    %0 = memref.load %arg1[%c0] : memref<1xi32, #tpu.memory_space<smem>>
    %c0_i32 = arith.constant 0 : i32
    %c0_i32_0 = arith.constant 0 : i32
    %c0_i32_1 = arith.constant 0 : i32
    return %0, %c0_i32, %c0_i32_0 : i32, i32, i32
  }
  func.func @transform_4(%arg0: i32, %arg1: memref<1xi32, #tpu.memory_space<smem>>) -> (i32, i32, i32) {
    %c0 = arith.constant 0 : index
    %0 = memref.load %arg1[%c0] : memref<1xi32, #tpu.memory_space<smem>>
    %c0_i32 = arith.constant 0 : i32
    %c0_i32_0 = arith.constant 0 : i32
    %c0_i32_1 = arith.constant 0 : i32
    return %0, %c0_i32, %c0_i32_0 : i32, i32, i32
  }
  func.func @transform_5(%arg0: i32, %arg1: memref<1xi32, #tpu.memory_space<smem>>) -> (i32, i32, i32) {
    %c0 = arith.constant 0 : index
    %0 = memref.load %arg1[%c0] : memref<1xi32, #tpu.memory_space<smem>>
    %c0_i32 = arith.constant 0 : i32
    %c0_i32_0 = arith.constant 0 : i32
    %c0_i32_1 = arith.constant 0 : i32
    return %0, %c0_i32, %c0_i32_0 : i32, i32, i32
  }
  func.func @transform_6(%arg0: i32, %arg1: memref<1xi32, #tpu.memory_space<smem>>) -> (i32, i32, i32) {
    %c0 = arith.constant 0 : index
    %0 = memref.load %arg1[%c0] : memref<1xi32, #tpu.memory_space<smem>>
    %c0_i32 = arith.constant 0 : i32
    %c0_i32_0 = arith.constant 0 : i32
    %c0_i32_1 = arith.constant 0 : i32
    return %0, %c0_i32, %c0_i32_0 : i32, i32, i32
  }
  func.func @transform_7(%arg0: i32, %arg1: memref<1xi32, #tpu.memory_space<smem>>) -> (i32, i32, i32) {
    %c0 = arith.constant 0 : index
    %0 = memref.load %arg1[%c0] : memref<1xi32, #tpu.memory_space<smem>>
    %c0_i32 = arith.constant 0 : i32
    %c0_i32_0 = arith.constant 0 : i32
    %c0_i32_1 = arith.constant 0 : i32
    return %0, %c0_i32, %c0_i32_0 : i32, i32, i32
  }
  func.func @transform_8(%arg0: i32, %arg1: memref<1xi32, #tpu.memory_space<smem>>) -> (i32, i32, i32) {
    %c0 = arith.constant 0 : index
    %0 = memref.load %arg1[%c0] : memref<1xi32, #tpu.memory_space<smem>>
    %c0_i32 = arith.constant 0 : i32
    %c0_i32_0 = arith.constant 0 : i32
    %c0_i32_1 = arith.constant 0 : i32
    return %0, %c0_i32, %c0_i32_0 : i32, i32, i32
  }
  func.func @transform_9(%arg0: i32, %arg1: memref<1xi32, #tpu.memory_space<smem>>) -> (i32, i32, i32) {
    %c0 = arith.constant 0 : index
    %0 = memref.load %arg1[%c0] : memref<1xi32, #tpu.memory_space<smem>>
    %c0_i32 = arith.constant 0 : i32
    %c0_i32_0 = arith.constant 0 : i32
    %c0_i32_1 = arith.constant 0 : i32
    return %0, %c0_i32, %c0_i32_0 : i32, i32, i32
  }
  func.func @transform_10(%arg0: i32, %arg1: memref<1xi32, #tpu.memory_space<smem>>) -> (i32, i32, i32) {
    %c0_i32 = arith.constant 0 : i32
    %c0_i32_0 = arith.constant 0 : i32
    %c0_i32_1 = arith.constant 0 : i32
    return %arg0, %c0_i32, %c0_i32_0 : i32, i32, i32
  }
  func.func @transform_11(%arg0: i32, %arg1: memref<1xi32, #tpu.memory_space<smem>>) -> (i32, i32) {
    %c0_i32 = arith.constant 0 : i32
    %c0_i32_0 = arith.constant 0 : i32
    %c0_i32_1 = arith.constant 0 : i32
    return %c0_i32, %c0_i32_0 : i32, i32
  }
}

</mosaic_0001>

<bundles_post_ra>
// kernel: _forward_seq.1
= control target key start
LH: loop header
LB: loop body
LE: loop exit
PB: predicated region body
PF: predicated region fallthrough
CT: control target
= control target key end

     0   :  { %19 = vsyncpa [#allocation6], 0  ;;  %s945_s0 = inlined_call_operand.<no memory space> [shape: s32[1], index: 0, kind: input, shape index: {}]   ;;  %s946_s1 = inlined_call_operand.hbm [shape: f32[1,4,16], index: 1, kind: input, shape index: {}]   ;;  %s947_s2 = inlined_call_operand.hbm [shape: f32[4,128], index: 2, kind: input, shape index: {}]   ;;  %s948_s3 = inlined_call_operand.hbm [shape: f32[5,16,384], index: 3, kind: input, shape index: {}]   ;;  %s949_s4 = inlined_call_operand.hbm [shape: f32[5,1,384], index: 4, kind: input, shape index: {}]   ;;  %s950_s5 = inlined_call_operand.hbm [shape: f32[5,32,384], index: 5, kind: input, shape index: {}]   ;;  %s951_s6 = inlined_call_operand.vmem [shape: f32[5,1,128], index: 6, kind: input, shape index: {}]   ;;  %s952_s7 = inlined_call_operand.hbm [shape: f32[5,32,128], index: 7, kind: input, shape index: {}]   ;;  %s953_s8 = inlined_call_operand.hbm [shape: f32[5,1,128], index: 8, kind: input, shape index: {}]   ;;  %s954_s9 = inlined_call_operand.vmem [shape: f32[5,1,128], index: 9, kind: input, shape index: {}]   ;;  %s955_s10 = inlined_call_operand.vmem [shape: f32[5,1,1], index: 10, kind: input, shape index: {}]   ;;  %s956_s11 = inlined_call_operand.vmem [shape: f32[1,4,1], index: 11, kind: output, shape index: {0}]   ;;  %s957_s12 = inlined_call_operand.hbm [shape: f32[4,128], index: 12, kind: output, shape index: {1}]  }
   0x1   :  { %20 = vsyncpa [#allocation9], 0 }
   0x2   :  { %21 = vsyncpa [#allocation12], 0 }
   0x3   :  { %22 = vsyncpa [#allocation15], 0  ;;  %s40_s23 = sshll.u32 %s947_s2, 4  ;;  %s41_s23 = int_to_ptr.hbm [resolvable:$true] %s40_s23 }
   0x4   :  { %23 = vsyncpa [#allocation7], 0  ;;  %s758_s24 = smov [#allocation8]   ;;  %s526_s28 = smul.u32 3, %s945_s0 }
   0x5   :  { %s42_s25 = sshll.u32 %s758_s24, 4  ;;  %s759_s15 = smov [#allocation11]   ;;  %s43_s25 = int_to_ptr.vmem [resolvable:$true] %s42_s25 }
   0x6   :  { %45 = dma.hbm_to_vmem [thread:$0]  %s41_s23, 64, %s43_s25, [#allocation9]  }
   0x7   :  { %s69_s13 = scalar_lea.hbm %s949_s4, %s526_s28  ;;  %s73_s16 = sshll.u32 %s759_s15, 4  ;;  %s74_s16 = int_to_ptr.vmem [resolvable:$true] %s73_s16 }
   0x8   :  { %s71_s14 = sshll.u32 %s69_s13, 4  ;;  %s584_s20 = scalar_lea.hbm %s949_s4, 15  ;;  %s72_s14 = int_to_ptr.hbm [resolvable:$true] %s71_s14 }
   0x9   :  { %s580_s2 = sshra.s32 %s72_s14, 4  ;;  %s581_s2 = int_to_ptr.hbm [resolvable:$true] %s580_s2 }
   0xa   :  { %s582_s17 = scalar_lea.hbm %s581_s2, 3  ;;  %p585_p1 = scmp.lt.s32.totalorder %s581_s2, %s949_s4 }
   0xb   :  { %p583_p0 = scmp.ne.s32.totalorder %s581_s2, %s582_s17  ;;  %p586_p2 = scmp.lt.s32.totalorder %s584_s20, %s582_s17 }
   0xd   :  { %p587_p3 = por %p586_p2, %p585_p1 }
   0xf   :  { %p588_p4 = pnand %p587_p3, %p583_p0 }
  0x11   :  { %591 = shalt.err (!%p588_p4)
}
  0x12   :  { %76 = dma.hbm_to_vmem [thread:$0]  %s72_s14, 48, %s74_s16, [#allocation12]  }
  0x13   :  { %s524_s25 = sshll.u32 %s945_s0, 5  ;;  %s760_s29 = smov [#allocation14]  }
  0x14   :  { %s108_s28 = scalar_lea.hbm %s952_s7, %s524_s25  ;;  %s111_s30 = sshll.u32 %s760_s29, 4  ;;  %s112_s30 = int_to_ptr.vmem [resolvable:$true] %s111_s30 }
  0x15   :  { %s109_s13 = sshll.u32 %s108_s28, 4  ;;  %s29_s2 = sshll.u32 %s946_s1, 4  ;;  %s110_s13 = int_to_ptr.hbm [resolvable:$true] %s109_s13  ;;  %s30_s2 = int_to_ptr.hbm [resolvable:$true] %s29_s2 }
  0x16   :  { %s604_s17 = sshra.s32 %s110_s13, 4  ;;  %s608_s19 = scalar_lea.hbm %s952_s7, 160  ;;  %s605_s17 = int_to_ptr.hbm [resolvable:$true] %s604_s17 }
  0x17   :  { %s606_s14 = scalar_lea.hbm %s605_s17, 32  ;;  %p609_p6 = scmp.lt.s32.totalorder %s605_s17, %s952_s7 }
  0x18   :  { %p607_p5 = scmp.ne.s32.totalorder %s605_s17, %s606_s14  ;;  %p610_p7 = scmp.lt.s32.totalorder %s608_s19, %s606_s14 }
  0x1a   :  { %p611_p8 = por %p610_p7, %p609_p6 }
  0x1c   :  { %p612_p9 = pnand %p611_p8, %p607_p5 }
  0x1e   :  { %615 = shalt.err (!%p612_p9)
}
  0x1f   :  { %s761_s22 = smov 128   ;;  %s762_s23 = smov 8  }
  0x20   :  { %117 = dma.hbm_to_vmem [thread:$0]  %s110_s13, 512, %s112_s30, [#allocation15], %s761_s22, %s761_s22, %s762_s23  }
  0x21   :  { %s763_s1 = smov [#allocation5]   ;;  %s525_s27 = smul.u32 48, %s945_s0 }
  0x22   :  { %s31_s24 = sshll.u32 %s763_s1, 4  ;;  %s764_s15 = smov [#allocation10]   ;;  %s32_s24 = int_to_ptr.vmem [resolvable:$true] %s31_s24 }
  0x23   :  { %34 = dma.hbm_to_vmem [thread:$0]  %s30_s2, 64, %s32_s24, [#allocation6]  }
  0x24   :  { %s53_s7 = scalar_lea.hbm %s948_s3, %s525_s27  ;;  %s56_s4 = sshll.u32 %s764_s15, 4  ;;  %s57_s4 = int_to_ptr.vmem [resolvable:$true] %s56_s4 }
  0x25   :  { %s54_s17 = sshll.u32 %s53_s7, 4  ;;  %s527_s13 = smul.u32 96, %s945_s0  ;;  %s55_s17 = int_to_ptr.hbm [resolvable:$true] %s54_s17 }
  0x26   :  { %s652_s16 = sshra.s32 %s55_s17, 4  ;;  %s656_s2 = scalar_lea.hbm %s948_s3, 240  ;;  %s653_s16 = int_to_ptr.hbm [resolvable:$true] %s652_s16 }
  0x27   :  { %s654_s18 = scalar_lea.hbm %s653_s16, 48  ;;  %p657_p11 = scmp.lt.s32.totalorder %s653_s16, %s948_s3 }
  0x28   :  { %p655_p10 = scmp.ne.s32.totalorder %s653_s16, %s654_s18  ;;  %p658_p12 = scmp.lt.s32.totalorder %s656_s2, %s654_s18 }
  0x2a   :  { %p659_p13 = por %p658_p12, %p657_p11 }
  0x2c   :  { %p660_p0 = pnand %p659_p13, %p655_p10 }
  0x2e   :  { %663 = shalt.err (!%p660_p0)
}
  0x2f   :  { %s765_s23 = smov 384   ;;  %s766_s1 = smov 24  }
  0x30   :  { %62 = dma.hbm_to_vmem [thread:$0]  %s55_s17, 768, %s57_s4, [#allocation9], %s765_s23, %s765_s23, %s766_s1  }
  0x31   :  { %s84_s26 = scalar_lea.hbm %s950_s5, %s527_s13  ;;  %s767_s28 = smov [#allocation13]  }
  0x32   :  { %s85_s27 = sshll.u32 %s84_s26, 4  ;;  %s87_s29 = sshll.u32 %s767_s28, 4  ;;  %s86_s27 = int_to_ptr.hbm [resolvable:$true] %s85_s27  ;;  %s88_s29 = int_to_ptr.vmem [resolvable:$true] %s87_s29 }
  0x33   :  { %s676_s7 = sshra.s32 %s86_s27, 4  ;;  %s680_s30 = scalar_lea.hbm %s950_s5, 480  ;;  %s677_s7 = int_to_ptr.hbm [resolvable:$true] %s676_s7 }
  0x34   :  { %s678_s15 = scalar_lea.hbm %s677_s7, 96  ;;  %p681_p2 = scmp.lt.s32.totalorder %s677_s7, %s950_s5 }
  0x35   :  { %p679_p1 = scmp.ne.s32.totalorder %s677_s7, %s678_s15  ;;  %p682_p3 = scmp.lt.s32.totalorder %s680_s30, %s678_s15 }
  0x37   :  { %p683_p4 = por %p682_p3, %p681_p2 }
  0x39   :  { %p684_p5 = pnand %p683_p4, %p679_p1 }
  0x3b   :  { %687 = shalt.err (!%p684_p5)
}
  0x3c   :  { %93 = dma.hbm_to_vmem [thread:$0]  %s86_s27, 1536, %s88_s29, [#allocation12], %s765_s23, %s765_s23, %s766_s1  }
  0x3d   :  { %s123_s20 = scalar_lea.hbm %s953_s8, %s945_s0  ;;  %s768_s21 = smov [#allocation16]  }
  0x3e   :  { %s125_s2 = sshll.u32 %s123_s20, 4  ;;  %s127_s22 = sshll.u32 %s768_s21, 4  ;;  %s126_s2 = int_to_ptr.hbm [resolvable:$true] %s125_s2  ;;  %s128_s22 = int_to_ptr.vmem [resolvable:$true] %s127_s22 }
  0x3f   :  { %s700_s24 = sshra.s32 %s126_s2, 4  ;;  %s704_s23 = scalar_lea.hbm %s953_s8, 5  ;;  %s701_s24 = int_to_ptr.hbm [resolvable:$true] %s700_s24 }
  0x40   :  { %s702_s5 = scalar_lea.hbm %s701_s24, 1  ;;  %p705_p7 = scmp.lt.s32.totalorder %s701_s24, %s953_s8 }
  0x41   :  { %p703_p6 = scmp.ne.s32.totalorder %s701_s24, %s702_s5  ;;  %p706_p8 = scmp.lt.s32.totalorder %s704_s23, %s702_s5 }
  0x43   :  { %p707_p9 = por %p706_p8, %p705_p7 }
  0x45   :  { %p708_p10 = pnand %p707_p9, %p703_p6 }
  0x47   :  { %711 = shalt.err (!%p708_p10)
}
  0x48   :  { %130 = dma.hbm_to_vmem [thread:$0]  %s126_s2, 16, %s128_s22, [#allocation15]  }
  0x49   :  { %748 = dma.done.wait [#allocation6], 64  }
  0x4a   :  { %749 = vsyncadd [#allocation6], 4294967232 }
  0x4b   :  { %750 = dma.done.wait [#allocation9], 832  }
  0x4c   :  { %751 = vsyncadd [#allocation9], 4294966464 }
  0x4d   :  { %752 = dma.done.wait [#allocation12], 1584  }
  0x4e   :  { %753 = vsyncadd [#allocation12], 4294965712 }
  0x4f   :  { %754 = dma.done.wait [#allocation15], 528  }
  0x50   :  { %755 = vsyncadd [#allocation15], 4294966768  ;;  %v216_v0 = vld [vmem:[#allocation10 + $0x18] sm:$0xff]  ;;  %v213_v2 = vld [vmem:[#allocation10] sm:$0xff]  ;;  %vm227_vm0 = vcmask 130048   ;;  %vm303_vm1 = vcmask 261120  }
  0x51   :  { %v300_v1 = vld [vmem:[#allocation13 + $0x48] sm:$0xff]  ;;  %245 = vmatpush.msra.mxu0 %v216_v0  ;;  %v211_v3 = vld [vmem:[#allocation5] sm:$0xf]  ;;  %v297_v4 = vld [vmem:[#allocation13 + $0x30] sm:$0xff]  ;;  %p189_p11 = scmp.lt.s32.totalorder %s945_s0, 4  ;;  %s769_s20 = smov [#allocation17]  }
  0x52   :  { %319 = vmatpush.msra.mxu3 %v300_v1  ;;  %v301_v5 = vld [vmem:[#allocation13 + $0x50] sm:$0xff]  ;;  %v294_v6 = vld [vmem:[#allocation13 + $0x18] sm:$0xff]  ;;  %v209_v9 = vld [vmem:[#allocation8] sm:$0xf]  ;;  %s476_s2 = sshll.u32 %s769_s20, 4  ;;  %s478_s24 = sshll.u32 %s957_s12, 4  ;;  %s477_s2 = int_to_ptr.vmem [resolvable:$true] %s476_s2  ;;  %s479_s24 = int_to_ptr.hbm [resolvable:$true] %s478_s24 }
  0x53   :  { %v217_v7 = vld [vmem:[#allocation10 + $0x20] sm:$0xff]  ;;  %246 = vmatpush.msra.mxu0 %v213_v2  ;;  %v214_v8 = vld [vmem:[#allocation10 + $0x8] sm:$0xff]  ;;  %v291_v11 = vld [vmem:[#allocation13] sm:$0xff]  ;;  %210 = vst [vmem:[#allocation2] sm:$0xf] %v209_v9  ;;  %s959_s0 = smov (!%p189_p11, %s945_s0), 4 }
  0x54   :  { %320 = vmatpush.msra.mxu3 %v297_v4  ;;  %515 = vmatmul.msk.f32.vlgmr.msra.gmra.mxu0 %vm227_vm0, %v211_v3  ;;  %v298_v10 = vld [vmem:[#allocation13 + $0x38] sm:$0xff]  ;;  %v295_v14 = vld [vmem:[#allocation13 + $0x20] sm:$0xff]  ;;  %v292_v16 = vld [vmem:[#allocation13 + $0x8] sm:$0xff]  ;;  %s191_s14 = scalar_lea.vmem %s951_s6, %s959_s0  ;;  %s198_s4 = scalar_lea.vmem %s954_s9, %s959_s0  ;;  %vm458_vm10 = vcmask 1043456   ;;  %vm467_vm11 = vcmask 3072  }
  0x55   :  { %265 = vmatpush.msra.mxu1 %v217_v7  ;;  %339 = vmatpush.msrb.mxu0 %v301_v5  ;;  %v218_v12 = vld [vmem:[#allocation10 + $0x28] sm:$0xff]  ;;  %v215_v13 = vld [vmem:[#allocation10 + $0x10] sm:$0xff]  ;;  %v296_v18 = vld [vmem:[#allocation13 + $0x28] sm:$0xff]  ;;  %s203_s19 = scalar_lea.vmem %s955_s10, %s959_s0 }
  0x56   :  { %321 = vmatpush.msra.mxu3 %v294_v6  ;;  %v302_v15 = vld [vmem:[#allocation13 + $0x58] sm:$0xff]  ;;  %285 = vmatpush.msra.mxu2 %v218_v12  ;;  %v299_v17 = vld [vmem:[#allocation13 + $0x40] sm:$0xff]  ;;  %v293_v20 = vld [vmem:[#allocation13 + $0x10] sm:$0xff] }
  0x57   :  { %266 = vmatpush.msra.mxu1 %v214_v8  ;;  %340 = vmatpush.msrb.mxu0 %v298_v10  ;;  %v219_v21 = vld [vmem:[#allocation11] sm:$0x7]  ;;  %v423_v35 = vld [vmem:[#allocation14 + $0x10] sm:$0xff]  ;;  %v422_v37 = vld [vmem:[#allocation14 + $0x8] sm:$0xff] }
  0x58   :  { %322 = vmatpush.msra.mxu3 %v291_v11  ;;  %516 = vmatmul.msk.f32.vlgmr.msra.gmra.mxu1 %vm227_vm0, %v211_v3  ;;  %v222_v23 = vperm.slane %v219_v21, 1  ;;  %v221_v26 = vperm.slane %v219_v21, 0  ;;  %v424_v34 = vld [vmem:[#allocation14 + $0x18] sm:$0xff]  ;;  %v421_v39 = vld [vmem:[#allocation14] sm:$0xff]  ;;  %v223_v53 = vperm.slane %v219_v21, 2 }
  0x59   :  { %286 = vmatpush.msra.mxu2 %v215_v13  ;;  %341 = vmatpush.msrb.mxu0 %v295_v14  ;;  %v540_v48 = vld [vmem:[%s191_s14] ss:$0 sm:$0xff] }
  0x5a   :  { %359 = vmatpush.msrb.mxu1 %v302_v15  ;;  %517 = vmatmul.msk.f32.vlgmr.msra.gmra.mxu2 %vm227_vm0, %v211_v3  ;;  %v904_v19 = vld [vmem:[#allocation2] sm:$0xf] }
  0x5b   :  { %342 = vmatpush.msrb.mxu0 %v292_v16  ;;  %518 = vmatmul.msk.f32.vlgmr.msra.gmra.mxu3 %vm303_vm1, %v904_v19  ;;  %v541_v11 = vld [vmem:[#allocation16] ss:$0 sm:$0xff] }
  0x5c   :  { %360 = vmatpush.msrb.mxu1 %v299_v17  ;;  %519 = vmatmul.msk.f32.vlgmr.msrb.gmra.mxu0 %vm303_vm1, %v904_v19  ;;  %v542_v14 = vld [vmem:[%s198_s4] ss:$0 sm:$0xff] }
  0x5d   :  { %444 = vmatpush.msrb.mxu2 %v424_v34 }
  0x5e   :  { %361 = vmatpush.msrb.mxu1 %v296_v18  ;;  %v543_v18 = vld [vmem:[%s203_s19] ss:$0 sm:$0xff] }
  0x5f   :  { %445 = vmatpush.msrb.mxu2 %v423_v35 }
  0x60   :  { %362 = vmatpush.msrb.mxu1 %v293_v20 }
  0x61   :  { %520 = vmatmul.msk.f32.vlgmr.msrb.gmra.mxu1 %vm303_vm1, %v904_v19  ;;  %446 = vmatpush.msrb.mxu2 %v422_v37 }
  0x63   :  { %447 = vmatpush.msrb.mxu2 %v421_v39 }
  0xd1   :  { %v248_v22 = vpop.f32.mrf.mxu0 }
  0xd2   :  { %v249_v29 = vadd.f32 %v248_v22, %v221_v26 }
  0xd5   :  { %v268_v24 = vpop.f32.mrf.mxu1 }
  0xd6   :  { %v269_v25 = vadd.f32 %v268_v24, %v222_v23 }
  0xd9   :  { %v344_v27 = vpop.f32.mrf.mxu0 }
  0xda   :  { %v387_v28 = vadd.f32 %v344_v27, %v269_v25 }
  0xdc   :  { %v522_v30 = vmul.f32 -1.442695, %v387_v28 }
  0xdd   :  { %v288_v55 = vpop.f32.mrf.mxu2 }
  0xde   :  { %544 = vpow2.f32 %v522_v30  ;;  %v324_v31 = vpop.f32.mrf.mxu3  ;;  %v364_v49 = vpop.f32.mrf.mxu1  ;;  %v289_v60 = vadd.f32 %v288_v55, %v223_v53 }
  0xdf   :  { %v367_v32 = vadd.f32 %v324_v31, %v249_v29  ;;  %v411_v57 = vadd.f32 %v540_v48, %v364_v49 }
  0xe1   :  { %v521_v33 = vmul.f32 -1.442695, %v367_v32 }
  0xe3   :  { %546 = vpow2.f32 %v521_v33 }
  0xe4   :  { %v545_v36 = vpop.eup %544 }
  0xe5   :  { %v391_v38 = vadd.f32 1.0, %v545_v36 }
  0xe7   :  { %548 = vrcp.f32 %v391_v38  ;;  %vm397_vm4 = vweird.f32 %v391_v38  ;;  %v403_v61 = vand.u32 2147483648, %v391_v38  ;;  %v401_v0 = vand.u32 2147483647, %v391_v38 }
  0xe9   :  { %v547_v40 = vpop.eup %546  ;;  %v404_v3 = vor.u32 1.1754944e-38, %v403_v61  ;;  %vm402_vm9 = vcmp.eq.f32.partialorder %v401_v0, 8.507059e+37 }
  0xea   :  { %v371_v41 = vadd.f32 1.0, %v547_v40 }
  0xec   :  { %550 = vrcp.f32 %v371_v41  ;;  %v383_v50 = vand.u32 2147483648, %v371_v41  ;;  %v381_v52 = vand.u32 2147483647, %v371_v41  ;;  %vm377_vm3 = vweird.f32 %v371_v41 }
  0xed   :  { %v549_v42 = vpop.eup %548 }
  0xee   :  { %v393_v43 = vmul.f32 %v549_v42, %v391_v38  ;;  %v384_v58 = vor.u32 1.1754944e-38, %v383_v50  ;;  %vm398_vm6 = vweird.f32 %v549_v42  ;;  %vm382_vm7 = vcmp.eq.f32.partialorder %v381_v52, 8.507059e+37 }
  0xef   :  { %vm399_vm8 = vmor %vm397_vm4, %vm398_vm6 }
  0xf0   :  { %v394_v46 = vsub.f32 1.0, %v393_v43 }
  0xf2   :  { %v551_v44 = vpop.eup %550  ;;  %v395_v54 = vmul.f32 %v549_v42, %v394_v46 }
  0xf3   :  { %v373_v45 = vmul.f32 %v551_v44, %v371_v41  ;;  %vm378_vm2 = vweird.f32 %v551_v44 }
  0xf4   :  { %vm379_vm5 = vmor %vm377_vm3, %vm378_vm2  ;;  %v396_v63 = vadd.f32 %v549_v42, %v395_v54 }
  0xf5   :  { %v374_v47 = vsub.f32 1.0, %v373_v45 }
  0xf6   :  { %v400_v4 = vsel %vm399_vm8, %v549_v42, %v396_v63 }
  0xf7   :  { %v375_v51 = vmul.f32 %v551_v44, %v374_v47  ;;  %v405_v5 = vsel %vm402_vm9, %v404_v3, %v400_v4 }
  0xf8   :  { %v415_v6 = vsub.f32 1.0, %v405_v5  ;;  %v417_v9 = vmul.f32 %v405_v5, %v904_v19 }
  0xf9   :  { %v376_v56 = vadd.f32 %v551_v44, %v375_v51 }
  0xfb   :  { %v380_v59 = vsel %vm379_vm5, %v551_v44, %v376_v56 }
  0xfc   :  { %v385_v62 = vsel %vm382_vm7, %v384_v58, %v380_v59 }
  0xfd   :  { %v412_v1 = vmul.f32 %v411_v57, %v385_v62 }
  0xff   :  { %v413_v2 = vadd.f32 %v412_v1, %v289_v60 }
 0x101   :  { %552 = vtanh.f32 %v413_v2 }
 0x107   :  { %v553_v7 = vpop.eup %552 }
 0x108   :  { %v416_v8 = vmul.f32 %v553_v7, %v415_v6 }
 0x10a   :  { %v418_v10 = vadd.f32 %v417_v9, %v416_v8 }
 0x10c   :  { %419 = vst [vmem:[#allocation2] sm:$0xf] %v418_v10  ;;  %523 = vmatmul.msk.f32.vlgmr.msrb.gmra.mxu2 %vm303_vm1, %v418_v10 }
 0x10d   :  { %420 = vst [vmem:[#allocation17] sm:$0xf] %v418_v10 }
 0x10e   :  { %481 = dma.vmem_to_hbm [thread:$0]  %s477_s2, 64, %s479_s24, [#allocation7]  }
 0x18f   :  { %v449_v12 = vpop.f32.mrf.mxu2 }
 0x190   :  { %v450_v13 = vadd.f32 %v541_v11, %v449_v12 }
 0x192   :  { %554 = vtanh.f32 %v450_v13 }
 0x198   :  { %v555_v15 = vpop.eup %554 }
 0x199   :  { %v457_v16 = vmul.f32 %v555_v15, %v542_v14 }
 0x19b   :  { %v459_v17 = vsel %vm458_vm10, %v457_v16, 0.0 }
 0x19c   :  { %460 = vadd.xlane.f32.xlu0 %v459_v17 }
 0x20f   :  { %v461_v19 = vpop.xlane.xlu0 %460 }
 0x210   :  { %v466_v20 = vadd.f32 %v543_v18, %v461_v19 }
 0x212   :  { %468 = vst.msk [vmem:[%s956_s11] sm:$0xf] %vm467_vm11, %v466_v20 }
 0x213   :  { %756 = dma.done.wait [#allocation7], 64  }
 0x214   :  { %757 = vsyncadd [#allocation7], 4294967232 }
 0x215   :  { %488 = vsyncpa [#allocation6], 1 }
 0x216   :  { %489 = vsyncpa [#allocation9], 1 }
 0x217   :  { %490 = vsyncpa [#allocation12], 1 }
 0x218   :  { %491 = vsyncpa [#allocation15], 1 }
 0x219   :  { %492 = vsyncpa [#allocation7], 1 }

</bundles_post_ra>
